<compile_context>
chip_gen: v6e
topology: v6e:2x2x1
jax: 0.10.0
libtpu: 0.0.40
codegen_flags: <defaults>
</compile_context>

<pallas_src>
import functools
import math

import numpy as np

import jax
import jax.numpy as jnp
from jax import lax
from jax.experimental import pallas as pl
from jax.experimental.pallas import tpu as pltpu

MAX_ITER = 50            # same cap as the PyTorch reference
NEWTON_CHECK_EVERY = 2   # Newton iterations per while-loop trip (amortizes the
                         # cross-lane "all converged" reduce)
TOL = 1e-6               # f32-meaningful tolerance (reference uses 1e-9)
LANES = 128


# ---------------------------------------------------------------------------
# pltpu.roll convention probe (result[i] = x[i - shift] for jnp.roll semantics)
# ---------------------------------------------------------------------------
_ROLL_SHIFTS = None


def _roll_shift_convention():
    """Returns (shift_down_by_1, shift_row3_to_row0) for sublane rolls."""
    global _ROLL_SHIFTS
    if _ROLL_SHIFTS is None:
        def probe(x_ref, o_ref):
            o_ref[...] = pltpu.roll(x_ref[...], shift=1, axis=0)

        x = jnp.broadcast_to(jnp.arange(8, dtype=jnp.float32)[:, None],
                             (8, LANES))
        y = pl.pallas_call(
            probe, out_shape=jax.ShapeDtypeStruct((8, LANES), jnp.float32))(x)
        if int(jax.device_get(y)[1, 0]) == 0:
            _ROLL_SHIFTS = (1, 5)    # jnp.roll convention: out[i] = x[i-shift]
        else:
            _ROLL_SHIFTS = (7, 3)    # opposite convention: out[i] = x[i+shift]
    return _ROLL_SHIFTS


# ---------------------------------------------------------------------------
# Kernel
# ---------------------------------------------------------------------------
def _make_moog_kernel(sh_dn1, sh_r3):
    """Build the kernel with static sublane-roll shift amounts."""

    def kernel(params_ref, u_ref, out_ref, state_ref, uprev_ref):
        # params (SMEM, 7): [gf, gr, gain, alpha, r, f, k]
        gf = params_ref[0]
        gr = params_ref[1]
        gain = params_ref[2]
        alpha = params_ref[3]
        r = params_ref[4]
        f = params_ref[5]
        k = params_ref[6]

        w = 2.0 * math.pi * gf * f
        c1 = k * (1.0 - 0.5 * alpha)       # scale for k_A_mul / k_b_mul
        c2 = k * (0.5 * alpha)             # scale for K / k_b_al
        grr = gr * r

        T = u_ref.shape[0]                 # time steps in this chunk
        Bp = u_ref.shape[1]                # lane-padded batch

        # persistent state scratch: zero it on the very first chunk
        @pl.when(pl.program_id(0) == 0)
        def _init():
            state_ref[...] = jnp.zeros_like(state_ref)
            uprev_ref[...] = jnp.zeros_like(uprev_ref)

        row = lax.broadcasted_iota(jnp.int32, (8, Bp), 0)
        mask03 = (row < 4).astype(jnp.float32)     # rows 0..3 hold x1..x4
        row0 = (row == 0).astype(jnp.float32)      # row 0 selector (B vector)
        c1w_m = (c1 * w) * mask03                  # hoisted constants
        c2w_m = (c2 * w) * mask03

        def step(n, carry):
            x, u_prev, out_acc = carry             # (8,Bp), (1,Bp), (8,Bp)
            u_n = u_ref[pl.ds(n, 1), :]            # (1, Bp)

            # ---- update_matrices: driven by batch element 0 (as in PyTorch) -
            x4p = x[3:4, 0:1]                      # previous_state[0, 3]
            upp = u_prev[:, 0:1]                   # previous_input[0]
            bx = grr * x4p
            # Fuse the 4 scalar tanh's into one packed EUP push (sublanes 0..3)
            tin = jnp.where(row == 0, x4p,
                  jnp.where(row == 1, 4.0 * bx,
                  jnp.where(row == 2, bx, upp)))
            th = jnp.tanh(tin)
            th_x4 = th[0:1, 0:1]
            th_4bx = th[1:2, 0:1]
            th_bx = th[2:3, 0:1]
            th_u = th[3:4, 0:1]

            x4_zero = x4p == 0.0
            a03 = jnp.where(x4_zero, -w * 4.0 * grr,
                            -w * th_4bx / jnp.where(x4_zero, 1.0, th_x4))
            bx_zero = bx == 0.0
            miu = jnp.where(bx_zero, 1.0, th_bx / jnp.where(bx_zero, 1.0, bx))
            beta = miu * (1.0 - th_bx * th_bx) / (1.0 - th_bx * th_u)
            b0 = w * beta                          # B = [b0, 0, 0, 0]^T

            # per-step constants for the packed matvec (hoisted out of Newton)
            c1_a03 = (c1 * a03) * row0             # (8, Bp)
            c2_a03 = (c2 * a03) * row0

            def a_mv(cw_m, ca03, v):
                # (scale*A) @ v for packed v (rows 0..3 live, rows 4..7 == 0):
                #   row i>0: scale*w*(v[i-1] - v[i]);  row 0: -scale*w*v0 + scale*a03*v3
                v_dn = pltpu.roll(v, shift=sh_dn1, axis=0)   # v_dn[i] = v[i-1]
                v_30 = pltpu.roll(v, shift=sh_r3, axis=0)    # v_30[0] = v[3]
                return cw_m * (v_dn - v) + ca03 * v_30

            # ---- p_n = x + c1*A@tanh(x) + (c1*b0*u_n + c2*b0*u_prev) * e0 ---
            tx = jnp.tanh(x)
            p = (x + a_mv(c1w_m, c1_a03, tx)
                 + (c1 * b0 * u_n + c2 * b0 * u_prev) * row0)

            # ---- damped-Newton fixed point, packed, per-lane early stop -----
            def newton_once(y, active):
                s = jnp.tanh(y)
                one_m = mask03 - s * s                     # 1 - tanh^2 (live rows)
                g = p + a_mv(c2w_m, c2_a03, s) - y
                jac = a_mv(c2w_m, c2_a03, one_m) - 1.0     # K@(1-th^2) - E
                d = g * pl.reciprocal(jac, approx=True)
                y = y - d * active                         # frozen lanes: no step
                lane_max = jnp.max(jnp.abs(d), axis=0, keepdims=True)  # (1,Bp)
                active = active * (lane_max > TOL).astype(jnp.float32)
                return y, active

            def cond_fn(st):
                it, _, active = st
                return jnp.logical_and(it < MAX_ITER, jnp.max(active) > 0.0)

            def body_fn(st):
                it, y, active = st
                for _ in range(NEWTON_CHECK_EVERY):
                    y, active = newton_once(y, active)
                return it + NEWTON_CHECK_EVERY, y, active

            active0 = jnp.ones((1, Bp), jnp.float32)
            _, y, _ = lax.while_loop(cond_fn, body_fn,
                                     (jnp.int32(0), x, active0))

            # ---- y_n = C @ x_n = gain * x4; buffer 8 rows -> one full store --
            rem = n % 8
            out_acc = jnp.where(row == rem, gain * y[3:4, :], out_acc)

            @pl.when(rem == 7)
            def _flush():
                base = pl.multiple_of(n - 7, 8)
                out_ref[pl.ds(base, 8), :] = out_acc

            return y, u_n, out_acc

        x0 = state_ref[...]
        up0 = uprev_ref[...]
        acc0 = jnp.zeros((8, Bp), jnp.float32)
        xT, uT, _ = lax.fori_loop(0, T, step, (x0, up0, acc0))

        # carry filter state / previous input into the next time chunk
        state_ref[...] = xT
        uprev_ref[...] = uT

    return kernel


# ---------------------------------------------------------------------------
# Wrapper
# ---------------------------------------------------------------------------
def _choose_t_chunk(S, Bp):
    # keep each (chunk, Bp) f32 buffer <= 4 MiB so double-buffered in + out
    # stays well under v7x's ~32 MiB scoped / 64 MiB physical VMEM.
    max_rows = max(8, ((4 * 1024 * 1024) // (4 * Bp)) // 8 * 8)
    t = min(512, max_rows)
    t = min(t, max(8, ((S + 7) // 8) * 8))
    return max(8, (t // 8) * 8)


@functools.partial(jax.jit, static_argnums=(2, 3, 4))
def _forward_impl(input_tensor, params, sh_dn1, sh_r3, t_chunk):
    B, S, _ = input_tensor.shape
    Bp = ((B + LANES - 1) // LANES) * LANES
    S_pad = ((S + t_chunk - 1) // t_chunk) * t_chunk

    # time-major, lane-dense (S_pad, Bp) slab; zero padding is benign (padded
    # lanes converge in one Newton iteration and never touch lane 0's matrices)
    u_t = jnp.transpose(input_tensor[:, :, 0]).astype(jnp.float32)
    u_t = jnp.pad(u_t, ((0, S_pad - S), (0, Bp - B)))

    kernel = _make_moog_kernel(sh_dn1, sh_r3)
    out = pl.pallas_call(
        kernel,
        out_shape=jax.ShapeDtypeStruct((S_pad, Bp), jnp.float32),
        grid_spec=pltpu.PrefetchScalarGridSpec(
            num_scalar_prefetch=0,
            grid=(S_pad // t_chunk,),
            in_specs=[
                pl.BlockSpec(memory_space=pltpu.MemorySpace.SMEM),  # params
                pl.BlockSpec((t_chunk, Bp), lambda t: (t, 0)),      # input chunk
            ],
            out_specs=pl.BlockSpec((t_chunk, Bp), lambda t: (t, 0)),
            scratch_shapes=[
                pltpu.VMEM((8, Bp), jnp.float32),   # packed filter state
                pltpu.VMEM((1, Bp), jnp.float32),   # previous input sample
            ],
        ),
        compiler_params=pltpu.CompilerParams(
            dimension_semantics=("arbitrary",),     # serial time recurrence
            vmem_limit_bytes=32 * 1024 * 1024,
        ),
    )(params, u_t)

    return jnp.transpose(out[:S, :B])[:, :, None]   # (B, S, 1)


def moog_vcf_rf_forward(input_tensor, params):
    """input_tensor: (batch, seq, 1) f32  ->  (batch, seq, 1) f32."""
    sh_dn1, sh_r3 = _roll_shift_convention()
    B, S, _ = input_tensor.shape
    Bp = ((B + LANES - 1) // LANES) * LANES
    t_chunk = _choose_t_chunk(S, Bp)
    return _forward_impl(input_tensor, params, sh_dn1, sh_r3, t_chunk)


def make_params(r, f, gain_ctor, sample_rate):
    # nn.Parameter values exactly as in MoogVCFRFModelCell.__init__
    # (the 'gain' buffer from the ctor is shadowed by the nn.Parameter gain).
    gf, gr, gain_p, alpha = 1.5755, 1.2305, 3.0912, 0.7624
    k = 1.0 / sample_rate
    del gain_ctor  # shadowed in the reference module, kept for signature parity
    return jnp.array([gf, gr, gain_p, alpha, r, f, k], dtype=jnp.float32)


# ---------------------------------------------------------------------------
# Pure numpy (float64) transcription of the PyTorch forward, for checking.
# ---------------------------------------------------------------------------
def reference_forward(x_np, params_np):
    gf, gr, gain, alpha, r, f, k = [float(v) for v in params_np]
    w = 2.0 * math.pi * gf * f
    c1 = k * (1.0 - alpha / 2.0)
    c2 = k * alpha / 2.0
    Bsz, S, _ = x_np.shape
    x_state = np.zeros((Bsz, 4), dtype=np.float64)
    u_prev = np.zeros((Bsz,), dtype=np.float64)
    out = np.zeros((Bsz, S, 1), dtype=np.float64)

    def a_mat(a03):
        return np.array([[-w, 0.0, 0.0, a03],
                         [w, -w, 0.0, 0.0],
                         [0.0, w, -w, 0.0],
                         [0.0, 0.0, w, -w]], dtype=np.float64)

    for n in range(S):
        x4p = x_state[0, 3]
        up0 = u_prev[0]
        if x4p == 0.0:
            a03 = -w * 4.0 * gr * r
        else:
            a03 = -w * math.tanh(4.0 * gr * r * x4p) / math.tanh(x4p)
        A = a_mat(a03)
        bx = gr * r * x4p
        miu = 1.0 if bx == 0.0 else math.tanh(bx) / bx
        beta = miu * (1.0 - math.tanh(bx) ** 2) / (1.0 - math.tanh(bx) * math.tanh(up0))
        b0 = w * beta
        u_n = x_np[:, n, 0].astype(np.float64)
        for i in range(Bsz):
            p = (x_state[i] + c1 * A.dot(np.tanh(x_state[i]))
                 + np.array([c1 * b0 * u_n[i], 0.0, 0.0, 0.0])
                 + np.array([c2 * b0 * u_prev[i], 0.0, 0.0, 0.0]))
            x_temp = x_state[i].copy()
            for _ in range(MAX_ITER):
                th = np.tanh(x_temp)
                g = p + c2 * A.dot(th) - x_temp
                J = c2 * A.dot(1.0 - th ** 2) - 1.0
                dx = g / J
                x_temp = x_temp - dx
                if np.all(np.abs(dx) <= 1e-9):
                    break
            x_state[i] = x_temp
            out[i, n, 0] = gain * x_temp[3]
        u_prev = u_n
    return out


if __name__ == "__main__":
    key = jax.random.PRNGKey(0)
    batch, seq = 2, 8
    x = 0.5 * jax.random.normal(key, (batch, seq, 1), dtype=jnp.float32)

    # MoogVCFRFModel(r=0.5, f=1000.0, gain=1.0, sample_rate=44100.0)
    params = make_params(r=0.5, f=1000.0, gain_ctor=1.0, sample_rate=44100.0)

    out = jax.block_until_ready(moog_vcf_rf_forward(x, params))

    ref = reference_forward(np.asarray(x), np.asarray(params))
    err = float(np.max(np.abs(np.asarray(out, dtype=np.float64) - ref)))
    assert out.shape == (batch, seq, 1), out.shape
    assert err < 5e-3, f"max abs err {err}"
    print("KERNEL_OK")
</pallas_src>

<mosaic_0001>
module attributes {stable_mosaic.version = 11 : i64} {
  func.func @probe(%arg0: memref<8x128xf32, #tpu.memory_space<vmem>>, %arg1: memref<8x128xf32, #tpu.memory_space<vmem>>) attributes {dimension_semantics = [], scalar_prefetch = 0 : i64, scratch_operands = 0 : i64, tpu.core_type = #tpu.core_type<tc>} {
    %c0 = arith.constant 0 : index
    %c0_0 = arith.constant 0 : index
    %0 = vector.load %arg0[%c0, %c0_0] : memref<8x128xf32, #tpu.memory_space<vmem>>, vector<8x128xf32>
    %c1_i32 = arith.constant 1 : i32
    %1 = tpu.dynamic_rotate %0 by %c1_i32 dim 0 : vector<8x128xf32>, i32 -> vector<8x128xf32>
    %c0_1 = arith.constant 0 : index
    %c0_2 = arith.constant 0 : index
    %2 = vector.load %arg1[%c0_1, %c0_2] : memref<8x128xf32, #tpu.memory_space<vmem>>, vector<8x128xf32>
    tpu.vector_store %arg1[%c0_1, %c0_2], %1 {strides = array<i32>} : memref<8x128xf32, #tpu.memory_space<vmem>>, vector<8x128xf32>,
    return
  }
}

</mosaic_0001>

<bundles_post_ra>
// kernel: tpu_custom_call.1
= control target key start
LH: loop header
LB: loop body
LE: loop exit
PB: predicated region body
PF: predicated region fallthrough
CT: control target
= control target key end

     0   :  { %6 = vsyncpa [#allocation3], 0  ;;  %s103_s0 = inlined_call_operand.hbm [shape: f32[8,128], index: 0, kind: input, shape index: {}]   ;;  %s104_s1 = inlined_call_operand.hbm [shape: f32[8,128], index: 1, kind: output, shape index: {}]  }
   0x1   :  { %7 = vsyncpa [#allocation4], 0  ;;  %s85_s6 = smov [#allocation2]  }
   0x2   :  { %s14_s7 = sshll.u32 %s85_s6, 4  ;;  %s15_s7 = int_to_ptr.vmem [resolvable:$true] %s14_s7 }
   0x3   :  { %s49_s8 = scalar_lea.vmem %s15_s7, 128  ;;  %p54_p1 = scmp.lt.s32.totalorder %s15_s7, %s15_s7 }
   0x4   :  { %p50_p0 = scmp.ne.s32.totalorder %s15_s7, %s49_s8  ;;  %p55_p2 = scmp.lt.s32.totalorder %s49_s8, %s49_s8 }
   0x6   :  { %p56_p3 = por %p55_p2, %p54_p1 }
   0x8   :  { %p57_p4 = pnand %p56_p3, %p50_p0 }
   0xa   :  { %60 = shalt.err (!%p57_p4)
}
   0xb   :  { %17 = dma.hbm_to_vmem [thread:$0]  %s103_s0, 128, %s15_s7, [#allocation3]  }
   0xc   :  { %81 = dma.done.wait [#allocation3], 128  }
   0xd   :  { %82 = vsyncadd [#allocation3], 4294967168  ;;  %s86_s11 = smov [#allocation5]   ;;  %v21_v0 = vld [vmem:[#allocation2] sm:$0xff] }
   0xe   :  { %s30_s12 = sshll.u32 %s86_s11, 4  ;;  %v22_v1 = vrot.slane %v21_v0, 7  ;;  %s31_s12 = int_to_ptr.vmem [resolvable:$true] %s30_s12 }
   0xf   :  { %s61_s13 = scalar_lea.vmem %s31_s12, 128  ;;  %p66_p6 = scmp.lt.s32.totalorder %s31_s12, %s31_s12 }
  0x10   :  { %23 = vst [vmem:[#allocation5] sm:$0xff] %v22_v1  ;;  %p62_p5 = scmp.ne.s32.totalorder %s31_s12, %s61_s13  ;;  %p67_p7 = scmp.lt.s32.totalorder %s61_s13, %s61_s13 }
  0x12   :  { %p68_p8 = por %p67_p7, %p66_p6 }
  0x14   :  { %p69_p9 = pnand %p68_p8, %p62_p5 }
  0x16   :  { %72 = shalt.err (!%p69_p9)
}
  0x17   :  { %33 = dma.vmem_to_hbm [thread:$0]  %s31_s12, 128, %s104_s1, [#allocation4]  }
  0x18   :  { %83 = dma.done.wait [#allocation4], 128  }
  0x19   :  { %84 = vsyncadd [#allocation4], 4294967168 }
  0x1a   :  { %37 = vsyncpa [#allocation3], 1 }
  0x1b   :  { %38 = vsyncpa [#allocation4], 1 }

</bundles_post_ra>
